<compile_context>
chip_gen: v7x
topology: tpu7x:2x2x1
jax: 0.10.0
libtpu: 0.0.40
codegen_flags: <defaults>
</compile_context>

<pallas_src>
import functools

import jax
import jax.numpy as jnp
from jax import lax
from jax.experimental import pallas as pl
from jax.experimental.pallas import tpu as pltpu


def _yolo_kernel(pred_ref, anch_ref, out_ref, *, stride, inv_g, g, lane_tile):
    # pred_ref: (1, A, C, LT) VMEM block for the current (sample, lane tile)
    # anch_ref: (A, 2, 1)     VMEM — anchors (w, h) in *pixel* units
    # out_ref : (1, A, C, LT) VMEM — decoded predictions (same layout)
    t = pl.program_id(1)
    p = pred_ref[0]                                   # (A, C, LT) f32
    C = p.shape[1]

    sig = jax.nn.sigmoid(p)                           # one full-tile sigmoid

    # In-kernel grid offsets for this lane tile (row-major flattening):
    #   global column k -> gx = k % G, gy = k // G   (done in f32, no int div)
    row = lax.broadcasted_iota(jnp.int32, (C, lane_tile), 0)
    col = lax.broadcasted_iota(jnp.int32, (C, lane_tile), 1)
    col = (col + t * lane_tile).astype(jnp.float32)
    gy = jnp.floor((col + 0.5) * inv_g)               # +0.5 margin vs rounding
    gx = col - gy * g
    off = jnp.where(row == 0, gx, gy)                 # row 0 -> gx, row 1 -> gy

    # Rows 0,1: (sigmoid + grid_offset) * stride ; rows >= 2: sigmoid.
    # Single full-tile (lane-dense, unmasked) store.
    out_ref[0] = jnp.where(row < 2, (sig + off) * stride, sig)
    # Rows 2,3: exp only on the two w/h rows, times anchor (pixel units).
    out_ref[0, :, 2:4, :] = jnp.exp(p[:, 2:4, :]) * anch_ref[...]


def yolo_layer_forward(x, anchors, num_classes, img_dim, *, max_lane_block=4096):
    """x: (N, A*(num_classes+5), G, G) float32 (NCHW, as in PyTorch).

    Returns (output, 0) with output shape (N, A*G*G, 5 + num_classes),
    matching the PyTorch YOLOLayer.forward inference path.
    """
    anchors = jnp.asarray(anchors, dtype=jnp.float32)         # (A, 2), pixels
    A = anchors.shape[0]
    C = num_classes + 5
    N, C_in, G, G2 = x.shape
    assert C_in == A * C and G == G2
    GG = G * G
    stride = float(img_dim) / float(G)

    # Lane tiling: multiple of 128, capped so big grids (G=52 -> GG=2704)
    # keep double-buffered in+out blocks comfortably inside VMEM.
    lane_tile = min(((GG + 127) // 128) * 128, max_lane_block)
    GG_pad = ((GG + lane_tile - 1) // lane_tile) * lane_tile
    num_lane_tiles = GG_pad // lane_tile

    # prediction = x.view(N, A, C, G, G) -> kernel layout (N, A, C, GG_pad)
    pred = x.reshape(N, A, C, GG).astype(jnp.float32)
    if GG_pad != GG:
        pred = jnp.pad(pred, ((0, 0), (0, 0), (0, 0), (0, GG_pad - GG)))

    anch = anchors.reshape(A, 2, 1)                   # stride pre-folded away

    kernel = functools.partial(
        _yolo_kernel, stride=stride, inv_g=1.0 / float(G), g=float(G),
        lane_tile=lane_tile)

    out_raw = pl.pallas_call(
        kernel,
        out_shape=jax.ShapeDtypeStruct((N, A, C, GG_pad), jnp.float32),
        grid=(N, num_lane_tiles),
        in_specs=[
            pl.BlockSpec((1, A, C, lane_tile), lambda n, t: (n, 0, 0, t)),
            pl.BlockSpec((A, 2, 1), lambda n, t: (0, 0, 0)),
        ],
        out_specs=pl.BlockSpec((1, A, C, lane_tile), lambda n, t: (n, 0, 0, t)),
        compiler_params=pltpu.CompilerParams(
            dimension_semantics=("parallel", "parallel")),
    )(pred, anch)

    # glue: drop pad, (N, A, C, GG) -> (N, A, GG, C) -> (N, A*GG, C)
    out_raw = out_raw[..., :GG]
    output = jnp.transpose(out_raw, (0, 1, 3, 2)).reshape(N, A * GG, C)
    # TODO(synk): training branch (build_targets + MSE/BCE losses) not
    # implemented; inference path (targets=None) only.
    return output, 0


def _reference_jax(x, anchors, num_classes, img_dim):
    """Pure-JAX re-implementation of the PyTorch forward (targets=None)."""
    anchors = jnp.asarray(anchors, dtype=jnp.float32)
    A = anchors.shape[0]
    C = num_classes + 5
    N, _, G, _ = x.shape
    stride = float(img_dim) / float(G)
    pred = jnp.transpose(x.reshape(N, A, C, G, G), (0, 1, 3, 4, 2))  # (N,A,G,G,C)
    sx = jax.nn.sigmoid(pred[..., 0])
    sy = jax.nn.sigmoid(pred[..., 1])
    w = pred[..., 2]
    h = pred[..., 3]
    conf = jax.nn.sigmoid(pred[..., 4])
    cls = jax.nn.sigmoid(pred[..., 5:])
    grid_x = jnp.tile(jnp.arange(G, dtype=jnp.float32), (G, 1)).reshape(1, 1, G, G)
    grid_y = jnp.tile(jnp.arange(G, dtype=jnp.float32), (G, 1)).T.reshape(1, 1, G, G)
    sa = anchors / stride
    aw = sa[:, 0].reshape(1, A, 1, 1)
    ah = sa[:, 1].reshape(1, A, 1, 1)
    bx = sx + grid_x
    by = sy + grid_y
    bw = jnp.exp(w) * aw
    bh = jnp.exp(h) * ah
    boxes = jnp.stack([bx, by, bw, bh], axis=-1)             # (N,A,G,G,4)
    out = jnp.concatenate(
        [boxes.reshape(N, -1, 4) * stride,
         conf.reshape(N, -1, 1),
         cls.reshape(N, -1, num_classes)], axis=-1)
    return out


if __name__ == "__main__":
    key = jax.random.PRNGKey(0)
    num_classes = 4
    anchors = [(10.0, 13.0), (16.0, 30.0), (33.0, 23.0)]
    A = len(anchors)
    N, G = 2, 16
    img_dim = 128
    C_in = A * (num_classes + 5)                              # 27

    x = jax.random.normal(key, (N, C_in, G, G), dtype=jnp.float32)

    out, loss = yolo_layer_forward(x, anchors, num_classes, img_dim)
    out = jax.block_until_ready(out)

    ref = _reference_jax(x, anchors, num_classes, img_dim)
    assert out.shape == (N, A * G * G, num_classes + 5), out.shape
    assert loss == 0
    assert jnp.allclose(out, ref, atol=1e-4, rtol=1e-4), float(
        jnp.max(jnp.abs(out - ref)))

    print("KERNEL_OK")
</pallas_src>

<mosaic_0001>
module attributes {stable_mosaic.version = 11 : i64} {
  func.func @_yolo_kernel(%arg0: i32, %arg1: i32, %arg2: memref<1x3x9x256xf32, #tpu.memory_space<vmem>>, %arg3: memref<3x2x1xf32, #tpu.memory_space<vmem>>, %arg4: memref<1x3x9x256xf32, #tpu.memory_space<vmem>>) attributes {dimension_semantics = [#tpu.dimension_semantics<parallel>, #tpu.dimension_semantics<parallel>], iteration_bounds = array<i64: 2, 1>, scalar_prefetch = 0 : i64, scratch_operands = 0 : i64, tpu.core_type = #tpu.core_type<tc>, window_params = [{transform_indices = @transform_0, window_bounds = array<i64: 1, 3, 9, 256>}, {pipeline_mode = #tpu.pipeline_mode<synchronous>, transform_indices = @transform_1, window_bounds = array<i64: 3, 2, 1>}, {transform_indices = @transform_2, window_bounds = array<i64: 1, 3, 9, 256>}]} {
    %c0 = arith.constant 0 : index
    %c0_0 = arith.constant 0 : index
    %c0_1 = arith.constant 0 : index
    %c0_2 = arith.constant 0 : index
    %0 = vector.load %arg2[%c0, %c0_0, %c0_1, %c0_2] : memref<1x3x9x256xf32, #tpu.memory_space<vmem>>, vector<1x3x9x256xf32>
    %1 = vector.shape_cast %0 : vector<1x3x9x256xf32> to vector<3x9x256xf32>
    %2 = arith.negf %1 : vector<3x9x256xf32>
    %3 = math.exp %2 : vector<3x9x256xf32>
    %cst = arith.constant 1.000000e+00 : f32
    %4 = vector.broadcast %cst : f32 to vector<3x9x256xf32>
    %5 = arith.addf %4, %3 : vector<3x9x256xf32>
    %6 = arith.divf %4, %5 : vector<3x9x256xf32>
    %7 = tpu.iota {dimensions = array<i32: 0>} : vector<9x256xi32>
    %8 = tpu.iota {dimensions = array<i32: 1>} : vector<9x256xi32>
    %c256_i32 = arith.constant 256 : i32
    %9 = arith.muli %arg1, %c256_i32 : i32
    %10 = vector.broadcast %9 : i32 to vector<9x256xi32>
    %11 = arith.addi %8, %10 : vector<9x256xi32>
    %12 = arith.sitofp %11 : vector<9x256xi32> to vector<9x256xf32>
    %cst_3 = arith.constant 5.000000e-01 : f32
    %13 = vector.broadcast %cst_3 : f32 to vector<9x256xf32>
    %14 = arith.addf %12, %13 : vector<9x256xf32>
    %cst_4 = arith.constant 6.250000e-02 : f32
    %15 = vector.broadcast %cst_4 : f32 to vector<9x256xf32>
    %16 = arith.mulf %14, %15 : vector<9x256xf32>
    %17 = math.floor %16 : vector<9x256xf32>
    %cst_5 = arith.constant 1.600000e+01 : f32
    %18 = vector.broadcast %cst_5 : f32 to vector<9x256xf32>
    %19 = arith.mulf %17, %18 : vector<9x256xf32>
    %20 = arith.subf %12, %19 : vector<9x256xf32>
    %c0_i32 = arith.constant 0 : i32
    %21 = vector.broadcast %c0_i32 : i32 to vector<9x256xi32>
    %22 = arith.cmpi eq, %7, %21 : vector<9x256xi32>
    %23 = arith.select %22, %20, %17 : vector<9x256xi1>, vector<9x256xf32>
    %c2_i32 = arith.constant 2 : i32
    %24 = vector.broadcast %c2_i32 : i32 to vector<9x256xi32>
    %25 = arith.cmpi slt, %7, %24 : vector<9x256xi32>
    %26 = vector.shape_cast %23 : vector<9x256xf32> to vector<1x9x256xf32>
    %27 = vector.broadcast %26 : vector<1x9x256xf32> to vector<3x9x256xf32>
    %28 = arith.addf %6, %27 : vector<3x9x256xf32>
    %cst_6 = arith.constant 8.000000e+00 : f32
    %29 = vector.broadcast %cst_6 : f32 to vector<3x9x256xf32>
    %30 = arith.mulf %28, %29 : vector<3x9x256xf32>
    %31 = vector.shape_cast %25 : vector<9x256xi1> to vector<1x9x256xi1>
    %32 = vector.broadcast %31 : vector<1x9x256xi1> to vector<3x9x256xi1>
    %33 = arith.select %32, %30, %6 : vector<3x9x256xi1>, vector<3x9x256xf32>
    %c0_7 = arith.constant 0 : index
    %c0_8 = arith.constant 0 : index
    %c0_9 = arith.constant 0 : index
    %c0_10 = arith.constant 0 : index
    %34 = vector.load %arg4[%c0_7, %c0_8, %c0_9, %c0_10] : memref<1x3x9x256xf32, #tpu.memory_space<vmem>>, vector<1x3x9x256xf32>
    %35 = vector.shape_cast %34 : vector<1x3x9x256xf32> to vector<3x9x256xf32>
    %36 = vector.shape_cast %33 : vector<3x9x256xf32> to vector<1x3x9x256xf32>
    tpu.vector_store %arg4[%c0_7, %c0_8, %c0_9, %c0_10], %36 {strides = array<i32>} : memref<1x3x9x256xf32, #tpu.memory_space<vmem>>, vector<1x3x9x256xf32>,
    %37 = vector.extract_strided_slice %1 {offsets = [0, 2, 0], sizes = [3, 2, 256], strides = [1, 1, 1]} : vector<3x9x256xf32> to vector<3x2x256xf32>
    %38 = math.exp %37 : vector<3x2x256xf32>
    %c0_11 = arith.constant 0 : index
    %c0_12 = arith.constant 0 : index
    %c0_13 = arith.constant 0 : index
    %39 = vector.load %arg3[%c0_11, %c0_12, %c0_13] : memref<3x2x1xf32, #tpu.memory_space<vmem>>, vector<3x2x1xf32>
    %40 = vector.broadcast %39 : vector<3x2x1xf32> to vector<3x2x256xf32>
    %41 = arith.mulf %38, %40 : vector<3x2x256xf32>
    %c0_14 = arith.constant 0 : index
    %c0_15 = arith.constant 0 : index
    %c2 = arith.constant 2 : index
    %c0_16 = arith.constant 0 : index
    %42 = vector.load %arg4[%c0_14, %c0_15, %c2, %c0_16] : memref<1x3x9x256xf32, #tpu.memory_space<vmem>>, vector<1x3x2x256xf32>
    %43 = vector.shape_cast %42 : vector<1x3x2x256xf32> to vector<3x2x256xf32>
    %44 = vector.shape_cast %41 : vector<3x2x256xf32> to vector<1x3x2x256xf32>
    tpu.vector_store %arg4[%c0_14, %c0_15, %c2, %c0_16], %44 {strides = array<i32>} : memref<1x3x9x256xf32, #tpu.memory_space<vmem>>, vector<1x3x2x256xf32>,
    return
  }
  func.func @transform_0(%arg0: i32, %arg1: i32) -> (i32, i32, i32, i32) {
    %c0_i32 = arith.constant 0 : i32
    %c0_i32_0 = arith.constant 0 : i32
    %c0_i32_1 = arith.constant 0 : i32
    return %arg0, %c0_i32, %c0_i32_0, %arg1 : i32, i32, i32, i32
  }
  func.func @transform_1(%arg0: i32, %arg1: i32) -> (i32, i32, i32) {
    %c0_i32 = arith.constant 0 : i32
    %c0_i32_0 = arith.constant 0 : i32
    %c0_i32_1 = arith.constant 0 : i32
    %c0_i32_2 = arith.constant 0 : i32
    return %c0_i32, %c0_i32_0, %c0_i32_1 : i32, i32, i32
  }
  func.func @transform_2(%arg0: i32, %arg1: i32) -> (i32, i32, i32, i32) {
    %c0_i32 = arith.constant 0 : i32
    %c0_i32_0 = arith.constant 0 : i32
    %c0_i32_1 = arith.constant 0 : i32
    return %arg0, %c0_i32, %c0_i32_0, %arg1 : i32, i32, i32, i32
  }
}

</mosaic_0001>

<bundles_post_ra>
// kernel: tpu_custom_call.1
= control target key start
LH: loop header
LB: loop body
LE: loop exit
PB: predicated region body
PF: predicated region fallthrough
CT: control target
= control target key end

     0   :  { %s630_s9 = smov 0   ;;  %s632_s10 = smov 0   ;;  %s760_s0 = inlined_call_operand.vmem [shape: f32[2,3,9,256], index: 0, kind: input, shape index: {}]   ;;  %s761_s1 = inlined_call_operand.vmem [shape: f32[3,2,1], index: 1, kind: input, shape index: {}]   ;;  %s762_s2 = inlined_call_operand.vmem [shape: f32[2,3,9,256], index: 2, kind: output, shape index: {}]  }
   0x1   :  { %s634_s11 = smov 0  }
   0x2 LB: > { %s24_s12 = sadd.s32 1, %s608_s10  ;;  %p485_p0 = scmp.ge.s32.totalorder %s612_s11, 1  ;;  %s612_s11 = sphi %s634_s11, %s12_s11   ;;  %s608_s10 = sphi %s632_s10, %s764_s10   ;;  %s604_s9 = sphi %s630_s9, %s763_s9  }
   0x3   : > { %p26_p1 = scmp.ge.s32.totalorder %s24_s12, 2  ;;  %p133_p2 = scmp.lt.s32.totalorder %s612_s11, 3 }
   0x5   : > { %s766_s12 = smov (%p26_p1, %s24_s12), 0  ;;  %p134_p3 = pnand %p485_p0, %p133_p2 }
   0x6   : > { %v361_v0 = vld [vmem:[%s761_s1] sm:$0x3] (!%p134_p3)  ;;  %v363_v1 = vld [vmem:[%s761_s1 + $0x4] sm:$0x3] (!%p134_p3)  ;;  %p164_p4 = scmp.lt.s32.totalorder (!%p134_p3), %s604_s9, 1  ;;  %v267_v2 = vlaneseq (!%p134_p3)  ;;  %v614_v3 = vmov (!%p134_p3), 0  }
   0x7   : > { %137 = sbr.rel (%p134_p3) target bundleno = 145 (0x91), region = 28  ;;  %528 = vset.pattern.permute.xlu0 (!%p134_p3), %v614_v3  ;;  %529 = vset.pattern.permute.xlu1 (!%p134_p3), %v614_v3  ;;  %v362_v5 = vld [vmem:[%s761_s1 + $0x2] sm:$0x3] (!%p134_p3) }
   0x8   : > { %366 = vperm.xlu0 (!%p134_p3), %528, %v361_v0   ;;  %374 = vperm.xlu1 (!%p134_p3), %529, %v363_v1   ;;  %v656_v4 = vand.u32 (!%p134_p3), 127, %v267_v2  ;;  %v696_v42 = vshrl.u32 (!%p134_p3), %v267_v2, 7 }
   0xa   : > { %v663_v6 = vadd.s32 (!%p134_p3), 128, %v656_v4  ;;  %v277_v12 = vcvt.s32.f32 (!%p134_p3), %v656_v4  ;;  %vm289_vm0 = vcmp.eq.s32.totalorder (!%p134_p3), %v696_v42, 0  ;;  %vm295_vm1 = vcmp.lt.s32.totalorder (!%p134_p3), %v696_v42, 2 }
   0xc   : > { %370 = vperm.xlu0 (!%p134_p3), %528, %v362_v5   ;;  %v278_v16 = vcvt.s32.f32 (!%p134_p3), %v663_v6  ;;  %v279_v23 = vadd.f32 (!%p134_p3), 0.5, %v277_v12 }
   0xe   : > { %s768_s9 = smov (!%p164_p4, %s604_s9), 1  ;;  %v280_v25 = vadd.f32 0.5, %v278_v16  ;;  %v281_v29 = vmul.f32 0.0625, %v279_v23 }
   0xf   : > { %s502_s19 = smul.u32 96, %s768_s9 }
  0x10   : > { %v282_v30 = vmul.f32 0.0625, %v280_v25  ;;  %v283_v33 = vfloor.f32 %v281_v29 }
  0x11   : > { %s670_s22 = scalar_lea.vmem %s760_s0, %s502_s19  ;;  %s712_s25 = scalar_lea.vmem %s762_s2, %s502_s19 }
  0x12   : > { %v673_v7 = vld [vmem:[%s670_s22] sm:$0xff]  ;;  %v676_v8 = vld [vmem:[%s670_s22 + $0x8] sm:$0xff]  ;;  %v185_v9 = vld [vmem:[%s670_s22 + $0x10] sm:$0x1]  ;;  %v284_v35 = vfloor.f32 %v282_v30  ;;  %v285_v43 = vmul.f32 16.0, %v283_v33 }
  0x13   : > { %v186_v10 = vld [vmem:[%s670_s22 + $0x18] sm:$0x1]  ;;  %v189_v11 = vld [vmem:[%s670_s22 + $0x30] sm:$0x1]  ;;  %v488_v15 = vmul.f32 -1.442695, %v673_v7 }
  0x14   : > { %v190_v13 = vld [vmem:[%s670_s22 + $0x38] sm:$0x1]  ;;  %v193_v14 = vld [vmem:[%s670_s22 + $0x50] sm:$0x1]  ;;  %v489_v17 = vmul.f32 -1.442695, %v676_v8  ;;  %v287_v54 = vsub.f32 %v277_v12, %v285_v43 }
  0x15   : > { %v490_v18 = vmul.f32 -1.442695, %v185_v9  ;;  %v491_v19 = vmul.f32 -1.442695, %v186_v10  ;;  %v194_v20 = vld [vmem:[%s670_s22 + $0x58] sm:$0x1]  ;;  %530 = vpow2.f32 %v488_v15 }
  0x16   : > { %v494_v21 = vmul.f32 -1.442695, %v189_v11  ;;  %532 = vpow2.f32 %v489_v17  ;;  %v495_v22 = vmul.f32 -1.442695, %v190_v13  ;;  %v498_v24 = vmul.f32 -1.442695, %v193_v14 }
  0x17   : > { %534 = vpow2.f32 %v490_v18  ;;  %v499_v26 = vmul.f32 -1.442695, %v194_v20  ;;  %v689_v27 = vld [vmem:[%s670_s22 + $0x40] sm:$0xff]  ;;  %v692_v28 = vld [vmem:[%s670_s22 + $0x48] sm:$0xff]  ;;  %v286_v46 = vmul.f32 16.0, %v284_v35  ;;  %v291_v61 = vsel %vm289_vm0, %v287_v54, %v283_v33 }
  0x18   : > { %536 = vpow2.f32 %v491_v19  ;;  %v496_v31 = vmul.f32 -1.442695, %v689_v27  ;;  %v497_v32 = vmul.f32 -1.442695, %v692_v28  ;;  %v699_v49 = vld [vmem:[%s670_s22 + $0x20] sm:$0xff]  ;;  %v703_v57 = vld [vmem:[%s670_s22 + $0x28] sm:$0xff] }
  0x19   : > { %538 = vpow2.f32 %v494_v21  ;;  %v288_v56 = vsub.f32 %v278_v16, %v286_v46  ;;  %v492_v58 = vmul.f32 -1.442695, %v699_v49  ;;  %v493_v63 = vmul.f32 -1.442695, %v703_v57 }
  0x1a   : > { %540 = vpow2.f32 %v495_v22  ;;  %v357_v43 = vmul.f32 1.442695, %v689_v27  ;;  %v355_v46 = vmul.f32 1.442695, %v703_v57 }
  0x1b   : > { %542 = vpow2.f32 %v498_v24  ;;  %v292_v0 = vsel %vm289_vm0, %v288_v56, %v284_v35 }
  0x1c   : > { %544 = vpow2.f32 %v499_v26 }
  0x1d   : > { %546 = vpow2.f32 %v496_v31 }
  0x1e   : > { %548 = vpow2.f32 %v497_v32 }
  0x1f   : > { %v531_v34 = vpop.eup %530 }
  0x20   : > { %v533_v36 = vpop.eup %532  ;;  %v231_v37 = vadd.f32 1.0, %v531_v34 }
  0x21   : > { %v535_v38 = vpop.eup %534  ;;  %v232_v39 = vadd.f32 1.0, %v533_v36 }
  0x22   : > { %v537_v40 = vpop.eup %536  ;;  %v233_v41 = vadd.f32 1.0, %v535_v38  ;;  %550 = vrcp.f32 %v231_v37 }
  0x23   : > { %v539_v44 = vpop.eup %538  ;;  %v234_v45 = vadd.f32 1.0, %v537_v40  ;;  %552 = vrcp.f32 %v232_v39  ;;  %v349_v40 = vmul.f32 1.442695, %v673_v7 }
  0x24   : > { %v541_v47 = vpop.eup %540  ;;  %v237_v48 = vadd.f32 1.0, %v539_v44  ;;  %554 = vrcp.f32 %v233_v41  ;;  %v351_v41 = vmul.f32 1.442695, %v676_v8  ;;  %v359_v44 = vmul.f32 1.442695, %v692_v28 }
  0x25   : > { %v543_v50 = vpop.eup %542  ;;  %v238_v51 = vadd.f32 1.0, %v541_v47  ;;  %556 = vrcp.f32 %v234_v45  ;;  %v353_v45 = vmul.f32 1.442695, %v699_v49 }
  0x26   : > { %v545_v52 = vpop.eup %544  ;;  %v241_v53 = vadd.f32 1.0, %v543_v50  ;;  %558 = vrcp.f32 %v237_v48 }
  0x27   : > { %v242_v55 = vadd.f32 1.0, %v545_v52  ;;  %560 = vrcp.f32 %v238_v51  ;;  %v547_v59 = vpop.eup %546 }
  0x28   : > { %562 = vrcp.f32 %v241_v53  ;;  %v549_v60 = vpop.eup %548  ;;  %v239_v62 = vadd.f32 1.0, %v547_v59 }
  0x29   : > { %564 = vrcp.f32 %v242_v55  ;;  %v240_v1 = vadd.f32 1.0, %v549_v60 }
  0x2a   : > { %566 = vpow2.f32 %v492_v58 }
  0x2b   : > { %568 = vrcp.f32 %v239_v62 }
  0x2c   : > { %v551_v2 = vpop.eup %550  ;;  %570 = vrcp.f32 %v240_v1 }
  0x2d   : > { %v553_v3 = vpop.eup %552  ;;  %v297_v4 = vadd.f32 %v551_v2, %v291_v61  ;;  %572 = vpow2.f32 %v493_v63 }
  0x2e   : > { %v555_v5 = vpop.eup %554  ;;  %v298_v6 = vadd.f32 %v553_v3, %v292_v0 }
  0x2f   : > { %v557_v9 = vpop.eup %556  ;;  %v309_v10 = vmul.f32 8.0, %v297_v4  ;;  %339 = vst [vmem:[%s712_s25 + $0x10] sm:$0x1] %v555_v5 }
  0x30   : > { %v559_v11 = vpop.eup %558  ;;  %v310_v12 = vmul.f32 8.0, %v298_v6  ;;  %340 = vst [vmem:[%s712_s25 + $0x18] sm:$0x1] %v557_v9 }
  0x31   : > { %v561_v13 = vpop.eup %560  ;;  %v325_v14 = vsel %vm295_vm1, %v309_v10, %v551_v2  ;;  %343 = vst [vmem:[%s712_s25 + $0x30] sm:$0x1] %v559_v11 }
  0x32   : > { %v563_v15 = vpop.eup %562  ;;  %v326_v16 = vsel %vm295_vm1, %v310_v12, %v553_v3  ;;  %337 = vst [vmem:[%s712_s25] sm:$0xff] %v325_v14  ;;  %344 = vst [vmem:[%s712_s25 + $0x38] sm:$0x1] %v561_v13 }
  0x33   : > { %v565_v17 = vpop.eup %564  ;;  %338 = vst [vmem:[%s712_s25 + $0x8] sm:$0xff] %v326_v16  ;;  %347 = vst [vmem:[%s712_s25 + $0x50] sm:$0x1] %v563_v15 }
  0x34   : > { %348 = vst [vmem:[%s712_s25 + $0x58] sm:$0x1] %v565_v17  ;;  %v567_v18 = vpop.eup %566 }
  0x35   : > { %v569_v19 = vpop.eup %568  ;;  %v235_v20 = vadd.f32 1.0, %v567_v18 }
  0x36   : > { %v571_v21 = vpop.eup %570  ;;  %v305_v22 = vadd.f32 %v569_v19, %v291_v61 }
  0x37   : > { %v573_v23 = vpop.eup %572  ;;  %v306_v24 = vadd.f32 %v571_v21, %v292_v0  ;;  %574 = vrcp.f32 %v235_v20 }
  0x38   : > { %v317_v25 = vmul.f32 8.0, %v305_v22  ;;  %v236_v26 = vadd.f32 1.0, %v573_v23 }
  0x39   : > { %v318_v29 = vmul.f32 8.0, %v306_v24 }
  0x3a   : > { %v333_v30 = vsel %vm295_vm1, %v317_v25, %v569_v19  ;;  %576 = vrcp.f32 %v236_v26 }
  0x3b   : > { %v334_v31 = vsel %vm295_vm1, %v318_v29, %v571_v21  ;;  %345 = vst [vmem:[%s712_s25 + $0x40] sm:$0xff] %v333_v30  ;;  %578 = vpow2.f32 %v349_v40 }
  0x3c   : > { %346 = vst [vmem:[%s712_s25 + $0x48] sm:$0xff] %v334_v31  ;;  %580 = vpow2.f32 %v351_v41 }
  0x3d   : > { %582 = vpow2.f32 %v357_v43 }
  0x3e   : > { %584 = vpow2.f32 %v359_v44 }
  0x3f   : > { %586 = vpow2.f32 %v353_v45 }
  0x40   : > { %588 = vpow2.f32 %v355_v46 }
  0x41   : > { %v575_v32 = vpop.eup %574 }
  0x42   : > { %v301_v33 = vadd.f32 %v575_v32, %v291_v61 }
  0x44   : > { %v577_v34 = vpop.eup %576  ;;  %v313_v35 = vmul.f32 8.0, %v301_v33 }
  0x45   : > { %v302_v36 = vadd.f32 %v577_v34, %v292_v0  ;;  %v579_v42 = vpop.eup %578 }
  0x46   : > { %v329_v37 = vsel %vm295_vm1, %v313_v35, %v575_v32  ;;  %v581_v7 = vpop.eup %580 }
  0x47   : > { %v314_v38 = vmul.f32 8.0, %v302_v36  ;;  %341 = vst [vmem:[%s712_s25 + $0x20] sm:$0xff] %v329_v37  ;;  %v583_v8 = vpop.eup %582 }
  0x48   : > { %v585_v27 = vpop.eup %584 }
  0x49   : > { %v330_v39 = vsel %vm295_vm1, %v314_v38, %v577_v34  ;;  %v587_v49 = vpop.eup %586 }
  0x4a   : > { %342 = vst [vmem:[%s712_s25 + $0x28] sm:$0xff] %v330_v39  ;;  %v589_v55 = vpop.eup %588 }
  0x87   : > { %v367_v47 = vpop.permute.xlu0 %366  ;;  %v375_v28 = vpop.permute.xlu1 %374 }
  0x88   : > { %v376_v48 = vrot.slane %v367_v47, 6  ;;  %v378_v50 = vrot.slane %v375_v28, 6 }
  0x8a   : > { %v382_v51 = vmul.f32 %v579_v42, %v376_v48  ;;  %v383_v52 = vmul.f32 %v581_v7, %v376_v48  ;;  %v386_v53 = vmul.f32 %v583_v8, %v378_v50  ;;  %v387_v54 = vmul.f32 %v585_v27, %v378_v50 }
  0x8b   : > { %v371_v56 = vpop.permute.xlu0 %370 }
  0x8c   : > { %388 = vst [vmem:[%s712_s25] sm:$0xc] %v382_v51  ;;  %389 = vst [vmem:[%s712_s25 + $0x8] sm:$0xc] %v383_v52  ;;  %v377_v57 = vrot.slane %v371_v56, 6 }
  0x8d   : > { %392 = vst [vmem:[%s712_s25 + $0x40] sm:$0xc] %v386_v53  ;;  %393 = vst [vmem:[%s712_s25 + $0x48] sm:$0xc] %v387_v54 }
  0x8e   : > { %v384_v58 = vmul.f32 %v587_v49, %v377_v57  ;;  %v385_v59 = vmul.f32 %v589_v55, %v377_v57 }
  0x90   : > { %390 = vst [vmem:[%s712_s25 + $0x20] sm:$0xc] %v384_v58  ;;  %391 = vst [vmem:[%s712_s25 + $0x28] sm:$0xc] %v385_v59 }
  0x91 PF: > { %s12_s11 = sadd.s32 1, %s612_s11   ;;  %s763_s9 = smov %s608_s10 }
  0x92   : > { %p9_p5 = scmp.ge.s32.totalorder %s12_s11, 4   ;;  %s764_s10 = smov %s766_s12 }
  0x94   :  { %11 = sbr.rel (!%p9_p5) target bundleno = 2 (0x2), region = 58 }

</bundles_post_ra>
